<compile_context>
chip_gen: v5e
topology: v5e:2x2
jax: 0.10.0
libtpu: 0.0.40
codegen_flags: <defaults>
</compile_context>

<pallas_src>
import functools

import jax
import jax.numpy as jnp
import numpy as np
from jax import lax
from jax.experimental import pallas as pl
from jax.experimental.pallas import tpu as pltpu


def _group_norm_kernel(x_ref, w_ref, b_ref, o_ref, *, eps, inv_count, hw, masked):
    # x_ref view : (1, Gb, Cg, HWp)  -- Gb groups; channels on sublanes, spatial on lanes.
    # w_ref/b_ref: (Gb, Cg, 1)       -- per-channel affine params (float32).
    x = x_ref[0]                                               # (Gb, Cg, HWp), native dtype

    # Pass 1: per-group mean, f32 accumulation (spatial pad is zero -> sum exact).
    row_sum = jnp.sum(x, axis=2, keepdims=True, dtype=jnp.float32)     # (Gb, Cg, 1)
    mean = jnp.sum(row_sum, axis=1, keepdims=True) * inv_count         # (Gb, 1, 1)

    # Pass 2: per-group biased variance (two-pass formula; ephemeral f32 temp only
    # feeds the reduction — it is not kept live for the output pass).
    d = x - mean                                               # promotes to f32
    if masked:
        lane = lax.broadcasted_iota(jnp.int32, d.shape, 2)
        d = jnp.where(lane < hw, d, 0.0)                       # zero the spatial pad
    row_sq = jnp.sum(d * d, axis=2, keepdims=True)             # (Gb, Cg, 1)
    var = jnp.sum(row_sq, axis=1, keepdims=True) * inv_count   # (Gb, 1, 1)
    inv_std = lax.rsqrt(var + eps)                             # (Gb, 1, 1)  (EUP)

    # Fold mean + affine into one scale/shift pass: o = x*scale + shift.
    scale = w_ref[...] * inv_std                               # (Gb, Cg, 1)
    shift = b_ref[...] - mean * scale                          # (Gb, Cg, 1)
    o_ref[0] = (x * scale + shift).astype(o_ref.dtype)


def _pick_groups_per_block(G, per_group_native, per_group_f32, budget):
    """Largest divisor Gb of G whose per-step VMEM estimate fits; stop once the
    input block reaches a DMA-friendly ~2 MiB."""
    target_block_bytes = 2 << 20
    best = 1
    for gb in range(1, G + 1):
        if G % gb != 0:
            continue
        # in + out double-buffered (native dtype) + ~2 f32-sized ephemeral passes + slack
        est = 4 * gb * per_group_native + 2 * gb * per_group_f32 + (1 << 20)
        if est > budget:
            break
        best = gb
        if gb * per_group_native >= target_block_bytes:
            break
    return best


def group_norm(x, weight, bias, num_groups=32, min_channels_per_group=4, eps=1e-5):
    """Pallas GroupNorm forward. x: (N, C, H, W) NCHW, weight/bias: (C,)."""
    N, C, H, W = x.shape
    G = min(num_groups, C // min_channels_per_group)
    assert C % G == 0, "num_channels must be divisible by num_groups"
    Cg = C // G
    HW = H * W
    L = 128
    HWp = -(-HW // L) * L          # spatial padded to a lane-dense multiple of 128
    masked = HWp != HW

    # Affine params stay in float32 (no bf16 round-trip).
    w_r = jnp.asarray(weight, jnp.float32).reshape(G, Cg, 1)
    b_r = jnp.asarray(bias, jnp.float32).reshape(G, Cg, 1)

    # (N, C, H, W) -> (N, G, Cg, HWp); a pure view when HW is already 128-aligned.
    x_flat = x.reshape(N, C, HW)
    if masked:
        x_flat = jnp.pad(x_flat, ((0, 0), (0, 0), (0, HWp - HW)))
    x_r = x_flat.reshape(N, G, Cg, HWp)

    itemsize = x.dtype.itemsize
    cg_pad = -(-Cg // 8) * 8                      # sublane padding of the VMEM block
    per_group_native = cg_pad * HWp * itemsize
    per_group_f32 = cg_pad * HWp * 4

    # Per-generation VMEM budget (v5e/v6e 128 MiB, v7x 64 MiB); clamp to ~85%.
    try:
        vmem_cap = int(pltpu.get_tpu_info().vmem_capacity_bytes)
    except Exception:
        vmem_cap = 64 << 20                        # safe floor (v7x per-core VMEM)
    vmem_budget = int(vmem_cap * 0.85)

    Gb = _pick_groups_per_block(G, per_group_native, per_group_f32, vmem_budget)
    # TODO(synk): if a single (Cg, HW) group block ever exceeds the VMEM budget,
    # add an inner spatial grid axis with VMEM stat accumulators + pl.when.

    kernel = functools.partial(
        _group_norm_kernel,
        eps=float(eps),
        inv_count=1.0 / float(Cg * HW),
        hw=HW,
        masked=masked,
    )

    cost = pl.CostEstimate(
        flops=5 * N * C * HW,                      # sum, sub, square, fma
        transcendentals=N * G,                     # rsqrt per group
        bytes_accessed=2 * N * C * HW * itemsize + 2 * C * 4,
    )

    out = pl.pallas_call(
        kernel,
        out_shape=jax.ShapeDtypeStruct(x_r.shape, x.dtype),
        grid_spec=pltpu.PrefetchScalarGridSpec(
            num_scalar_prefetch=0,
            grid=(N, G // Gb),
            in_specs=[
                pl.BlockSpec((1, Gb, Cg, HWp), lambda n, g: (n, g, 0, 0)),
                pl.BlockSpec((Gb, Cg, 1), lambda n, g: (g, 0, 0)),
                pl.BlockSpec((Gb, Cg, 1), lambda n, g: (g, 0, 0)),
            ],
            out_specs=pl.BlockSpec((1, Gb, Cg, HWp), lambda n, g: (n, g, 0, 0)),
        ),
        compiler_params=pltpu.CompilerParams(
            dimension_semantics=("parallel", "parallel"),
            vmem_limit_bytes=vmem_budget,
        ),
        cost_estimate=cost,
    )(x_r, w_r, b_r)

    out = out.reshape(N, C, HWp)
    if masked:
        out = out[:, :, :HW]
    return out.reshape(N, C, H, W)


def _group_norm_ref(x, weight, bias, num_groups, eps):
    N, C, H, W = x.shape
    G = num_groups
    xr = x.reshape(N, G, -1).astype(jnp.float32)
    mean = xr.mean(axis=-1, keepdims=True)
    var = ((xr - mean) ** 2).mean(axis=-1, keepdims=True)
    xn = ((xr - mean) * lax.rsqrt(var + eps)).reshape(N, C, H, W)
    return (xn * weight[None, :, None, None] + bias[None, :, None, None]).astype(x.dtype)


if __name__ == "__main__":
    key = jax.random.PRNGKey(0)

    N, C, H, W = 2, 16, 16, 16
    num_groups = 32
    min_channels_per_group = 4
    eps = 1e-5
    G = min(num_groups, C // min_channels_per_group)  # = 4

    x = jax.random.normal(key, (N, C, H, W), dtype=jnp.float32)
    # Parameters per nn.Module __init__: ones / zeros of shape (C,)
    weight = jnp.ones((C,), dtype=jnp.float32)
    bias = jnp.zeros((C,), dtype=jnp.float32)

    y = group_norm(x, weight, bias, num_groups=num_groups,
                   min_channels_per_group=min_channels_per_group, eps=eps)
    y = jax.block_until_ready(y)

    y_ref = _group_norm_ref(x, weight, bias, G, eps)
    np.testing.assert_allclose(np.asarray(y), np.asarray(y_ref), atol=1e-5, rtol=1e-5)

    print("KERNEL_OK")
</pallas_src>

<mosaic_0001>
module attributes {stable_mosaic.version = 11 : i64} {
  func.func @_group_norm_kernel(%arg0: i32, %arg1: i32, %arg2: memref<1x4x4x256xf32, #tpu.memory_space<vmem>>, %arg3: memref<4x4x1xf32, #tpu.memory_space<vmem>>, %arg4: memref<4x4x1xf32, #tpu.memory_space<vmem>>, %arg5: memref<1x4x4x256xf32, #tpu.memory_space<vmem>>) attributes {dimension_semantics = [#tpu.dimension_semantics<parallel>, #tpu.dimension_semantics<parallel>], iteration_bounds = array<i64: 2, 1>, scalar_prefetch = 0 : i64, scratch_operands = 0 : i64, tpu.core_type = #tpu.core_type<tc>, window_params = [{transform_indices = @transform_0, window_bounds = array<i64: 1, 4, 4, 256>}, {transform_indices = @transform_1, window_bounds = array<i64: 4, 4, 1>}, {transform_indices = @transform_2, window_bounds = array<i64: 4, 4, 1>}, {transform_indices = @transform_3, window_bounds = array<i64: 1, 4, 4, 256>}]} {
    %c0 = arith.constant 0 : index
    %c0_0 = arith.constant 0 : index
    %c0_1 = arith.constant 0 : index
    %c0_2 = arith.constant 0 : index
    %0 = vector.load %arg2[%c0, %c0_0, %c0_1, %c0_2] : memref<1x4x4x256xf32, #tpu.memory_space<vmem>>, vector<1x4x4x256xf32>
    %1 = vector.shape_cast %0 : vector<1x4x4x256xf32> to vector<4x4x256xf32>
    %cst = arith.constant dense<0.000000e+00> : vector<4x4xf32>
    %2 = vector.multi_reduction <add>, %1, %cst [2] : vector<4x4x256xf32> to vector<4x4xf32>
    %3 = vector.shape_cast %2 : vector<4x4xf32> to vector<4x4x1xf32>
    %cst_3 = arith.constant dense<0.000000e+00> : vector<4x1xf32>
    %4 = vector.multi_reduction <add>, %3, %cst_3 [1] : vector<4x4x1xf32> to vector<4x1xf32>
    %5 = vector.shape_cast %4 : vector<4x1xf32> to vector<4x1x1xf32>
    %cst_4 = arith.constant 9.765625E-4 : f32
    %6 = vector.broadcast %cst_4 : f32 to vector<4x1x1xf32>
    %7 = arith.mulf %5, %6 : vector<4x1x1xf32>
    %8 = vector.broadcast %7 : vector<4x1x1xf32> to vector<4x4x256xf32>
    %9 = arith.subf %1, %8 : vector<4x4x256xf32>
    %10 = arith.mulf %9, %9 : vector<4x4x256xf32>
    %cst_5 = arith.constant dense<0.000000e+00> : vector<4x4xf32>
    %11 = vector.multi_reduction <add>, %10, %cst_5 [2] : vector<4x4x256xf32> to vector<4x4xf32>
    %12 = vector.shape_cast %11 : vector<4x4xf32> to vector<4x4x1xf32>
    %cst_6 = arith.constant dense<0.000000e+00> : vector<4x1xf32>
    %13 = vector.multi_reduction <add>, %12, %cst_6 [1] : vector<4x4x1xf32> to vector<4x1xf32>
    %14 = vector.shape_cast %13 : vector<4x1xf32> to vector<4x1x1xf32>
    %cst_7 = arith.constant 9.765625E-4 : f32
    %15 = vector.broadcast %cst_7 : f32 to vector<4x1x1xf32>
    %16 = arith.mulf %14, %15 : vector<4x1x1xf32>
    %cst_8 = arith.constant 9.99999974E-6 : f32
    %17 = vector.broadcast %cst_8 : f32 to vector<4x1x1xf32>
    %18 = arith.addf %16, %17 : vector<4x1x1xf32>
    %19 = math.rsqrt %18 : vector<4x1x1xf32>
    %c0_9 = arith.constant 0 : index
    %c0_10 = arith.constant 0 : index
    %c0_11 = arith.constant 0 : index
    %20 = vector.load %arg3[%c0_9, %c0_10, %c0_11] : memref<4x4x1xf32, #tpu.memory_space<vmem>>, vector<4x4x1xf32>
    %21 = vector.broadcast %19 : vector<4x1x1xf32> to vector<4x4x1xf32>
    %22 = arith.mulf %20, %21 : vector<4x4x1xf32>
    %c0_12 = arith.constant 0 : index
    %c0_13 = arith.constant 0 : index
    %c0_14 = arith.constant 0 : index
    %23 = vector.load %arg4[%c0_12, %c0_13, %c0_14] : memref<4x4x1xf32, #tpu.memory_space<vmem>>, vector<4x4x1xf32>
    %24 = vector.broadcast %7 : vector<4x1x1xf32> to vector<4x4x1xf32>
    %25 = arith.mulf %24, %22 : vector<4x4x1xf32>
    %26 = arith.subf %23, %25 : vector<4x4x1xf32>
    %27 = vector.broadcast %22 : vector<4x4x1xf32> to vector<4x4x256xf32>
    %28 = arith.mulf %1, %27 : vector<4x4x256xf32>
    %29 = vector.broadcast %26 : vector<4x4x1xf32> to vector<4x4x256xf32>
    %30 = arith.addf %28, %29 : vector<4x4x256xf32>
    %c0_15 = arith.constant 0 : index
    %c0_16 = arith.constant 0 : index
    %c0_17 = arith.constant 0 : index
    %c0_18 = arith.constant 0 : index
    %31 = vector.load %arg5[%c0_15, %c0_16, %c0_17, %c0_18] : memref<1x4x4x256xf32, #tpu.memory_space<vmem>>, vector<1x4x4x256xf32>
    %32 = vector.shape_cast %31 : vector<1x4x4x256xf32> to vector<4x4x256xf32>
    %33 = vector.shape_cast %30 : vector<4x4x256xf32> to vector<1x4x4x256xf32>
    tpu.vector_store %arg5[%c0_15, %c0_16, %c0_17, %c0_18], %33 {strides = array<i32>} : memref<1x4x4x256xf32, #tpu.memory_space<vmem>>, vector<1x4x4x256xf32>,
    return
  }
  func.func @transform_0(%arg0: i32, %arg1: i32) -> (i32, i32, i32, i32) {
    %c0_i32 = arith.constant 0 : i32
    %c0_i32_0 = arith.constant 0 : i32
    %c0_i32_1 = arith.constant 0 : i32
    return %arg0, %arg1, %c0_i32, %c0_i32_0 : i32, i32, i32, i32
  }
  func.func @transform_1(%arg0: i32, %arg1: i32) -> (i32, i32, i32) {
    %c0_i32 = arith.constant 0 : i32
    %c0_i32_0 = arith.constant 0 : i32
    %c0_i32_1 = arith.constant 0 : i32
    return %arg1, %c0_i32, %c0_i32_0 : i32, i32, i32
  }
  func.func @transform_2(%arg0: i32, %arg1: i32) -> (i32, i32, i32) {
    %c0_i32 = arith.constant 0 : i32
    %c0_i32_0 = arith.constant 0 : i32
    %c0_i32_1 = arith.constant 0 : i32
    return %arg1, %c0_i32, %c0_i32_0 : i32, i32, i32
  }
  func.func @transform_3(%arg0: i32, %arg1: i32) -> (i32, i32, i32, i32) {
    %c0_i32 = arith.constant 0 : i32
    %c0_i32_0 = arith.constant 0 : i32
    %c0_i32_1 = arith.constant 0 : i32
    return %arg0, %arg1, %c0_i32, %c0_i32_0 : i32, i32, i32, i32
  }
}

</mosaic_0001>

<bundles_post_ra>
// kernel: tpu_custom_call.1
= control target key start
LH: loop header
LB: loop body
LE: loop exit
PB: predicated region body
PF: predicated region fallthrough
CT: control target
= control target key end

     0   :  { %8 = vsyncpa [#allocation3], 0  ;;  %s1157_s0 = inlined_call_operand.hbm [shape: f32[2,4,4,256], index: 0, kind: input, shape index: {}]   ;;  %s1158_s1 = inlined_call_operand.vmem [shape: f32[4,4,1], index: 1, kind: input, shape index: {}]   ;;  %s1159_s2 = inlined_call_operand.vmem [shape: f32[4,4,1], index: 2, kind: input, shape index: {}]   ;;  %s1160_s3 = inlined_call_operand.hbm [shape: f32[2,4,4,256], index: 3, kind: output, shape index: {}]  }
   0x1   :  { %10 = vsyncpa [#allocation3 + $0x1], 0 }
   0x2   :  { %11 = vsyncpa [#allocation4], 0 }
   0x3   :  { %13 = vsyncpa [#allocation4 + $0x1], 0  ;;  %s949_s12 = smov 0   ;;  %s951_s13 = smov 0  }
   0x4   :  { %s953_s14 = smov 0   ;;  %s955_s15 = smov 0  }
   0x5   :  { %s957_s16 = smov 0   ;;  %s959_s17 = smov 0  }
   0x6 LB: > { %s711_s18 = sadd.s32 4294967295, %s921_s17   ;;  %s712_s19 = sadd.s32 4294967294, %s921_s17   ;;  %s921_s17 = sphi %s959_s17, %s19_s17   ;;  %s917_s16 = sphi %s957_s16, %s1169_s16   ;;  %s913_s15 = sphi %s955_s15, %s1168_s15   ;;  %s909_s14 = sphi %s953_s14, %s1167_s14   ;;  %s905_s13 = sphi %s951_s13, %s1166_s13   ;;  %s901_s12 = sphi %s949_s12, %s1165_s12  }
   0x7   : > { %s31_s20 = sadd.s32 1, %s917_s16  ;;  %s40_s21 = sadd.s32 1, %s909_s14 }
   0x8   : > { %p33_p0 = scmp.ge.s32.totalorder %s31_s20, 2  ;;  %p47_p1 = scmp.ne.s32.totalorder %s909_s14, %s905_s13 }
   0x9   : > { %p48_p2 = scmp.eq.s32.totalorder %s921_s17, 0  ;;  %p53_p3 = scmp.ne.s32.totalorder %s905_s13, %s901_s12 }
   0xa   : > { %s1171_s20 = smov (%p33_p0, %s31_s20), 0  ;;  %p54_p5 = scmp.eq.s32.totalorder %s711_s18, 0 }
   0xb   : > { %p990_p4 = por %p48_p2, %p47_p1  ;;  %s35_s23 = ssub.s32 %s917_s16, %s1171_s20 }
   0xc   : > { %p131_p6 = scmp.eq.s32.totalorder %s711_s18, 1  ;;  %p38_p7 = scmp.eq.s32.totalorder %s35_s23, 0 }
   0xd   : > { %p996_p8 = por %p54_p5, %p53_p3  ;;  %p137_p10 = scmp.eq.s32.totalorder %s712_s19, 1 }
   0xe   : > { %p1000_p9 = por %p131_p6, %p47_p1  ;;  %p716_p12 = scmp.ge.s32.totalorder %s921_s17, 2 }
   0xf   : > { %s1005_s26 = scalar_select %p38_p7, %s909_s14, %s40_s21  }
  0x10   : > { %p1007_p11 = por %p137_p10, %p53_p3  ;;  %p742_p13 = scmp.lt.s32.totalorder %s921_s17, 2 }
  0x11   : > { %s175_s28 = sand.u32 1, %s909_s14   ;;  %s728_s30 = sshll.u32 %s917_s16, 5 }
  0x12   : > { %s717_s29 = sshll.u32 %s175_s28, 5  ;;  %s187_s6 = scalar_lea.hbm %s1157_s0, %s728_s30 }
  0x13   : > { %s179_s7 = scalar_lea.vmem [#allocation2], %s717_s29  ;;  %s188_s9 = sshll.u32 %s187_s6, 4  ;;  %s189_s9 = int_to_ptr.hbm [resolvable:$true] %s188_s9 }
  0x14   : > { %s190_s8 = sshll.u32 %s179_s7, 4  ;;  %p735_p0 = pnand %p742_p13, %p990_p4  ;;  %s191_s8 = int_to_ptr.vmem [resolvable:$true] %s190_s8 }
  0x15   : > { %p720_p1 = scmp.ge.s32.totalorder %s921_s17, 1  ;;  %s176_s10 = scalar_lea.sflag [#allocation3], %s175_s28 }
  0x16   : > { %s923_s11 = smov 128   ;;  %s924_s18 = smov 8  }
  0x17   : > { %737 = dma.hbm_to_vmem [thread:$0]  (!%p735_p0), %s189_s9, 512, %s191_s8, %s176_s10, %s923_s11, %s923_s11, %s924_s18  }
  0x18   : > { %p198_p2 = scmp.lt.s32.totalorder %s921_s17, 3 }
  0x1a   : > { %p199_p3 = pnand %p720_p1, %p198_p2 }
  0x1b   : > { %s1023_s19 = sand.u32 (!%p199_p3), 1, %s905_s13  }
  0x1c   : > { %202 = sbr.rel (%p199_p3) target bundleno = 490 (0x1ea), region = 32  ;;  %s721_s21 = sshll.u32 (!%p199_p3), %s1023_s19, 5 }
  0x1d   : > { %s205_s23 = scalar_lea.sflag (!%p199_p3), [#allocation3], %s1023_s19  ;;  %s208_s22 = scalar_lea.vmem (!%p199_p3), [#allocation2], %s721_s21 }
  0x21   : > { %892 = dma.done.wait (%p996_p8), %s205_s23, 512  }
  0x22   : > { %894 = vsyncadd (%p996_p8), %s205_s23, 4294966784  ;;  %v1033_v0 = vld [vmem:[%s208_s22 + $0x10] sm:$0xff]  ;;  %v1035_v1 = vld [vmem:[%s208_s22] sm:$0xff]  ;;  %vm287_vm0 = vcmask 1043456   ;;  %s241_s28 = scalar_lea.vmem [#allocation5], %s721_s21  ;;  %s729_s29 = sshll.u32 %s913_s15, 5 }
  0x23   : > { %v1037_v2 = vld [vmem:[%s208_s22 + $0x18] sm:$0xff]  ;;  %272 = vst [vmem:[#allocation1 + $0x20] ss:$2 sm:$0xff] %v1033_v0  ;;  %v1040_v3 = vld [vmem:[%s208_s22 + $0x8] sm:$0xff]  ;;  %s590_s4 = scalar_lea.hbm %s1160_s3, %s729_s29  ;;  %s591_s5 = sshll.u32 %s241_s28, 4  ;;  %s592_s5 = int_to_ptr.vmem [resolvable:$true] %s591_s5 }
  0x24   : > { %264 = vst [vmem:[#allocation1] ss:$2 sm:$0xff] %v1035_v1  ;;  %s593_s6 = sshll.u32 %s590_s4, 4  ;;  %s576_s7 = scalar_lea.sflag [#allocation4], %s1023_s19  ;;  %s594_s6 = int_to_ptr.hbm [resolvable:$true] %s593_s6 }
  0x25   : > { %276 = vst [vmem:[#allocation1 + $0x30] ss:$2 sm:$0xff] %v1037_v2  ;;  %s853_s15 = sshra.s32 %s594_s6, 4  ;;  %s859_s11 = scalar_lea.hbm %s1160_s3, 64  ;;  %s854_s15 = int_to_ptr.hbm [resolvable:$true] %s853_s15 }
  0x26   : > { %268 = vst [vmem:[#allocation1 + $0x10] ss:$2 sm:$0xff] %v1040_v3  ;;  %s855_s8 = scalar_lea.hbm %s854_s15, 32  ;;  %p860_p7 = scmp.lt.s32.totalorder %s854_s15, %s1160_s3 }
  0x27   : > { %p856_p4 = scmp.ne.s32.totalorder %s854_s15, %s855_s8  ;;  %p861_p8 = scmp.lt.s32.totalorder %s859_s11, %s855_s8 }
  0x29   : > { %p857_p5 = pnand %p856_p4, %p1000_p9  ;;  %p862_p10 = por %p861_p8, %p860_p7 }
  0x2a   : > { %v273_v4 = vld.sshfl [vmem:[#allocation1 + $0x20] sm:$0xff pattern:$0x75316420]  ;;  %v274_v5 = vld.sshfl [vmem:[#allocation1 + $0x28] sm:$0xff pattern:$0x75316420] }
  0x2b   : > { %v298_v6 = vsel %vm287_vm0, %v273_v4, 0.0  ;;  %v299_v7 = vsel %vm287_vm0, %v274_v5, 0.0  ;;  %v265_v8 = vld.sshfl [vmem:[#allocation1] sm:$0xff pattern:$0x75316420]  ;;  %p858_p6 = pneg %p857_p5 }
  0x2c   : > { %v300_v9 = vadd.f32 %v299_v7, %v298_v6  ;;  %v266_v10 = vld.sshfl [vmem:[#allocation1 + $0x8] sm:$0xff pattern:$0x75316420]  ;;  %v288_v11 = vsel %vm287_vm0, %v265_v8, 0.0 }
  0x2d   : > { %v289_v12 = vsel %vm287_vm0, %v266_v10, 0.0  ;;  %v277_v13 = vld.sshfl [vmem:[#allocation1 + $0x30] sm:$0xff pattern:$0x75316420]  ;;  %p863_p13 = pnand %p862_p10, %p858_p6 }
  0x2e   : > { %301 = vadd.xlane.f32.xlu1 %v300_v9  ;;  %v290_v14 = vadd.f32 %v289_v12, %v288_v11  ;;  %v278_v15 = vld.sshfl [vmem:[#allocation1 + $0x38] sm:$0xff pattern:$0x75316420]  ;;  %v303_v16 = vsel %vm287_vm0, %v277_v13, 0.0 }
  0x2f   : > { %v304_v17 = vsel %vm287_vm0, %v278_v15, 0.0  ;;  %v269_v18 = vld.sshfl [vmem:[#allocation1 + $0x10] sm:$0xff pattern:$0x75316420] }
  0x30   : > { %291 = vadd.xlane.f32.xlu0 %v290_v14  ;;  %v270_v19 = vld.sshfl [vmem:[#allocation1 + $0x18] sm:$0xff pattern:$0x75316420]  ;;  %v293_v20 = vsel %vm287_vm0, %v269_v18, 0.0  ;;  %v305_v22 = vadd.f32 %v304_v17, %v303_v16 }
  0x31   : > { %v294_v21 = vsel %vm287_vm0, %v270_v19, 0.0 }
  0x32   : > { %v295_v23 = vadd.f32 %v294_v21, %v293_v20 }
  0x36   : > { %306 = vadd.xlane.f32.xlu1 %v305_v22 }
  0x38   : > { %296 = vadd.xlane.f32.xlu0 %v295_v23 }
  0xa1   : > { %v302_v24 = vpop.xlane.xlu1 %301 }
  0xa2   : > { %v322_v25 = vsel %vm287_vm0, %v302_v24, 0.0 }
  0xa3   : > { %v323_v26 = vrot.slane %v322_v25, 4  ;;  %v292_v27 = vpop.xlane.xlu0 %291 }
  0xa4   : > { %v308_v28 = vsel %vm287_vm0, %v292_v27, 0.0 }
  0xa5   : > { %v324_v29 = vadd.f32 %v323_v26, %v322_v25  ;;  %v309_v30 = vrot.slane %v308_v28, 4 }
  0xa7   : > { %v325_v31 = vrot.slane %v324_v29, 2  ;;  %v310_v32 = vadd.f32 %v309_v30, %v308_v28 }
  0xa9   : > { %v326_v33 = vadd.f32 %v325_v31, %v324_v29  ;;  %v311_v34 = vrot.slane %v310_v32, 2  ;;  %v307_v35 = vpop.xlane.xlu1 %306 }
  0xaa   : > { %v329_v36 = vsel %vm287_vm0, %v307_v35, 0.0  ;;  %v925_v35 = vmov 0  }
  0xab   : > { %v327_v37 = vrot.slane %v326_v33, 1  ;;  %v312_v38 = vadd.f32 %v311_v34, %v310_v32  ;;  %v330_v39 = vrot.slane %v329_v36, 4  ;;  %v297_v40 = vpop.xlane.xlu0 %296  ;;  %800 = vset.pattern.permute.xlu1 %v925_v35  ;;  %798 = vset.pattern.permute.xlu2 %v925_v35 }
  0xac   : > { %v315_v41 = vsel %vm287_vm0, %v297_v40, 0.0  ;;  %799 = vset.pattern.permute.xlu0 %v925_v35 }
  0xad   : > { %v328_v42 = vadd.f32 %v327_v37, %v326_v33  ;;  %v313_v43 = vrot.slane %v312_v38, 1  ;;  %v331_v44 = vadd.f32 %v330_v39, %v329_v36  ;;  %v316_v45 = vrot.slane %v315_v41, 4 }
  0xaf   : > { %v1057_v46 = vmul.f32 0.0009765625, %v328_v42  ;;  %v314_v47 = vadd.f32 %v313_v43, %v312_v38  ;;  %v332_v48 = vrot.slane %v331_v44, 2  ;;  %v317_v49 = vadd.f32 %v316_v45, %v315_v41 }
  0xb1   : > { %v342_v50 = vsub.f32 %v1033_v0, %v1057_v46  ;;  %v1061_v51 = vmul.f32 0.0009765625, %v314_v47  ;;  %v333_v52 = vadd.f32 %v332_v48, %v331_v44  ;;  %v318_v53 = vrot.slane %v317_v49, 2 }
  0xb3   : > { %v346_v54 = vmul.f32 %v342_v50, %v342_v50  ;;  %v340_v55 = vsub.f32 %v1035_v1, %v1061_v51  ;;  %v334_v56 = vrot.slane %v333_v52, 1  ;;  %v319_v57 = vadd.f32 %v318_v53, %v317_v49 }
  0xb5   : > { %360 = vst [vmem:[#allocation1 + $0x20] ss:$2 sm:$0xff] %v346_v54  ;;  %v344_v58 = vmul.f32 %v340_v55, %v340_v55  ;;  %v335_v59 = vadd.f32 %v334_v56, %v333_v52  ;;  %v320_v60 = vrot.slane %v319_v57, 1 }
  0xb7   : > { %352 = vst [vmem:[#allocation1] ss:$2 sm:$0xff] %v344_v58  ;;  %v1065_v61 = vmul.f32 0.0009765625, %v335_v59  ;;  %v321_v62 = vadd.f32 %v320_v60, %v319_v57 }
  0xb9   : > { %v343_v63 = vsub.f32 %v1037_v2, %v1065_v61  ;;  %v1069_v4 = vmul.f32 0.0009765625, %v321_v62 }
  0xbb   : > { %v347_v5 = vmul.f32 %v343_v63, %v343_v63  ;;  %v341_v6 = vsub.f32 %v1040_v3, %v1069_v4 }
  0xbc   : > { %v361_v7 = vld.sshfl [vmem:[#allocation1 + $0x20] sm:$0xff pattern:$0x75316420]  ;;  %v362_v8 = vld.sshfl [vmem:[#allocation1 + $0x28] sm:$0xff pattern:$0x75316420] }
  0xbd   : > { %364 = vst [vmem:[#allocation1 + $0x30] ss:$2 sm:$0xff] %v347_v5  ;;  %v345_v9 = vmul.f32 %v341_v6, %v341_v6  ;;  %v385_v10 = vsel %vm287_vm0, %v361_v7, 0.0  ;;  %v386_v11 = vsel %vm287_vm0, %v362_v8, 0.0 }
  0xbe   : > { %v387_v12 = vadd.f32 %v386_v11, %v385_v10  ;;  %v353_v13 = vld.sshfl [vmem:[#allocation1] sm:$0xff pattern:$0x75316420]  ;;  %v354_v14 = vld.sshfl [vmem:[#allocation1 + $0x8] sm:$0xff pattern:$0x75316420] }
  0xbf   : > { %356 = vst [vmem:[#allocation1 + $0x10] ss:$2 sm:$0xff] %v345_v9  ;;  %v375_v15 = vsel %vm287_vm0, %v353_v13, 0.0  ;;  %v376_v16 = vsel %vm287_vm0, %v354_v14, 0.0 }
  0xc0   : > { %388 = vadd.xlane.f32.xlu0 %v387_v12  ;;  %v377_v17 = vadd.f32 %v376_v16, %v375_v15 }
  0xc2   : > { %378 = vadd.xlane.f32.xlu2 %v377_v17 }
  0xc4   : > { %v365_v18 = vld.sshfl [vmem:[#allocation1 + $0x30] sm:$0xff pattern:$0x75316420]  ;;  %v366_v19 = vld.sshfl [vmem:[#allocation1 + $0x38] sm:$0xff pattern:$0x75316420] }
  0xc5   : > { %v390_v20 = vsel %vm287_vm0, %v365_v18, 0.0  ;;  %v391_v21 = vsel %vm287_vm0, %v366_v19, 0.0 }
  0xc6   : > { %v392_v22 = vadd.f32 %v391_v21, %v390_v20  ;;  %v357_v23 = vld.sshfl [vmem:[#allocation1 + $0x10] sm:$0xff pattern:$0x75316420]  ;;  %v358_v24 = vld.sshfl [vmem:[#allocation1 + $0x18] sm:$0xff pattern:$0x75316420] }
  0xc7   : > { %v380_v25 = vsel %vm287_vm0, %v357_v23, 0.0  ;;  %v381_v26 = vsel %vm287_vm0, %v358_v24, 0.0 }
  0xc8   : > { %393 = vadd.xlane.f32.xlu1 %v392_v22  ;;  %v382_v27 = vadd.f32 %v381_v26, %v380_v25  ;;  %v473_v26 = vld [vmem:[%s1158_s1 + $0x8] sm:$0xf] }
  0xca   : > { %383 = vadd.xlane.f32.xlu2 %v382_v27 }
 0x133   : > { %v389_v28 = vpop.xlane.xlu0 %388 }
 0x134   : > { %v409_v29 = vsel %vm287_vm0, %v389_v28, 0.0 }
 0x135   : > { %v379_v30 = vpop.xlane.xlu2 %378  ;;  %v410_v31 = vrot.slane %v409_v29, 4 }
 0x136   : > { %v395_v32 = vsel %vm287_vm0, %v379_v30, 0.0  ;;  %v471_v30 = vld [vmem:[%s1158_s1] sm:$0xf] }
 0x137   : > { %v396_v33 = vrot.slane %v395_v32, 4  ;;  %v411_v34 = vadd.f32 %v410_v31, %v409_v29 }
 0x139   : > { %v397_v36 = vadd.f32 %v396_v33, %v395_v32  ;;  %v412_v37 = vrot.slane %v411_v34, 2 }
 0x13b   : > { %v398_v38 = vrot.slane %v397_v36, 2  ;;  %v413_v39 = vadd.f32 %v412_v37, %v411_v34  ;;  %v394_v40 = vpop.xlane.xlu1 %393 }
 0x13c   : > { %v416_v41 = vsel %vm287_vm0, %v394_v40, 0.0 }
 0x13d   : > { %v399_v42 = vadd.f32 %v398_v38, %v397_v36  ;;  %v414_v43 = vrot.slane %v413_v39, 1  ;;  %v417_v44 = vrot.slane %v416_v41, 4  ;;  %v384_v45 = vpop.xlane.xlu2 %383 }
 0x13e   : > { %v402_v47 = vsel %vm287_vm0, %v384_v45, 0.0  ;;  %v472_v45 = vld [vmem:[%s1158_s1 + $0x4] sm:$0xf] }
 0x13f   : > { %v400_v48 = vrot.slane %v399_v42, 1  ;;  %v415_v49 = vadd.f32 %v414_v43, %v413_v39  ;;  %v418_v50 = vadd.f32 %v417_v44, %v416_v41  ;;  %v403_v52 = vrot.slane %v402_v47, 4  ;;  %v474_v41 = vld [vmem:[%s1158_s1 + $0xc] sm:$0xf] }
 0x141   : > { %v401_v53 = vadd.f32 %v400_v48, %v399_v42  ;;  %v425_v54 = vmul.f32 0.0009765625, %v415_v49  ;;  %v419_v55 = vrot.slane %v418_v50, 2  ;;  %v404_v56 = vadd.f32 %v403_v52, %v402_v47 }
 0x143   : > { %v423_v57 = vmul.f32 0.0009765625, %v401_v53  ;;  %v429_v58 = vadd.f32 1e-05, %v425_v54  ;;  %v420_v59 = vadd.f32 %v419_v55, %v418_v50  ;;  %v405_v60 = vrot.slane %v404_v56, 2  ;;  %v480_v50 = vld [vmem:[%s1159_s2 + $0x4] sm:$0xf] }
 0x144   : > { %v479_v55 = vld [vmem:[%s1159_s2] sm:$0xf] }
 0x145   : > { %v427_v62 = vadd.f32 1e-05, %v423_v57  ;;  %801 = vrsqrt.f32 %v429_v58  ;;  %v421_v63 = vrot.slane %v420_v59, 1  ;;  %v406_v5 = vadd.f32 %v405_v60, %v404_v56 }
 0x146   : > { %vm457_vm2 = vweird.f32 %v429_v58 }
 0x147   : > { %803 = vrsqrt.f32 %v427_v62  ;;  %v422_v6 = vadd.f32 %v421_v63, %v420_v59  ;;  %v407_v7 = vrot.slane %v406_v5, 1  ;;  %vm437_vm4 = vweird.f32 %v427_v62 }
 0x148   : > { %v926_v63 = vmov 839922192  }
 0x149   : > { %v426_v8 = vmul.f32 0.0009765625, %v422_v6  ;;  %v408_v9 = vadd.f32 %v407_v7, %v406_v5  ;;  %v508_v5 = vunpack.c.l.s4 %v926_v63 }
 0x14b   : > { %v802_v10 = vpop.eup %801  ;;  %v430_v11 = vadd.f32 1e-05, %v426_v8  ;;  %v424_v12 = vmul.f32 0.0009765625, %v408_v9  ;;  %v509_v6 = vunpack.c.0.s8 %v508_v5 }
 0x14c   : > { %v452_v13 = vmul.f32 %v802_v10, %v429_v58  ;;  %vm458_vm1 = vweird.f32 %v802_v10  ;;  %v482_v58 = vld [vmem:[%s1159_s2 + $0xc] sm:$0xf] }
 0x14d   : > { %v804_v14 = vpop.eup %803  ;;  %805 = vrsqrt.f32 %v430_v11  ;;  %v428_v15 = vadd.f32 1e-05, %v424_v12  ;;  %vm459_vm5 = vmor %vm457_vm2, %vm458_vm1  ;;  %vm467_vm8 = vweird.f32 %v430_v11 }
 0x14e   : > { %v432_v16 = vmul.f32 %v804_v14, %v427_v62  ;;  %v453_v17 = vmul.f32 %v802_v10, %v452_v13  ;;  %vm438_vm3 = vweird.f32 %v804_v14 }
 0x14f   : > { %807 = vrsqrt.f32 %v428_v15  ;;  %vm439_vm6 = vmor %vm437_vm4, %vm438_vm3  ;;  %vm447_vm11 = vweird.f32 %v428_v15 }
 0x150   : > { %v433_v18 = vmul.f32 %v804_v14, %v432_v16  ;;  %v454_v19 = vmul.f32 0.5, %v453_v17 }
 0x152   : > { %v434_v20 = vmul.f32 0.5, %v433_v18  ;;  %v455_v21 = vsub.f32 1.5, %v454_v19 }
 0x153   : > { %v806_v22 = vpop.eup %805 }
 0x154   : > { %v462_v23 = vmul.f32 %v806_v22, %v430_v11  ;;  %v435_v24 = vsub.f32 1.5, %v434_v20  ;;  %v456_v25 = vmul.f32 %v802_v10, %v455_v21  ;;  %vm468_vm7 = vweird.f32 %v806_v22 }
 0x155   : > { %v808_v27 = vpop.eup %807  ;;  %vm469_vm10 = vmor %vm467_vm8, %vm468_vm7 }
 0x156   : > { %v442_v28 = vmul.f32 %v808_v27, %v428_v15  ;;  %v436_v29 = vmul.f32 %v804_v14, %v435_v24  ;;  %v460_v31 = vsel %vm459_vm5, %v802_v10, %v456_v25  ;;  %v463_v32 = vmul.f32 %v806_v22, %v462_v23 }
 0x157   : > { %v477_v33 = vmul.f32 %v473_v26, %v460_v31  ;;  %vm448_vm9 = vweird.f32 %v808_v27 }
 0x158   : > { %v440_v34 = vsel %vm439_vm6, %v804_v14, %v436_v29  ;;  %v464_v35 = vmul.f32 0.5, %v463_v32  ;;  %v443_v36 = vmul.f32 %v808_v27, %v442_v28  ;;  %vm449_vm12 = vmor %vm447_vm11, %vm448_vm9 }
 0x159   : > { %v475_v37 = vmul.f32 %v471_v30, %v440_v34  ;;  %501 = vperm.xlu1 %800, %v477_v33  }
 0x15a   : > { %v465_v38 = vsub.f32 1.5, %v464_v35  ;;  %v444_v39 = vmul.f32 0.5, %v443_v36 }
 0x15b   : > { %493 = vperm.xlu2 %798, %v475_v37   ;;  %v483_v54 = vmul.f32 %v475_v37, %v1061_v51  ;;  %v481_v51 = vld [vmem:[%s1159_s2 + $0x8] sm:$0xf] }
 0x15c   : > { %v466_v40 = vmul.f32 %v806_v22, %v465_v38  ;;  %v445_v42 = vsub.f32 1.5, %v444_v39 }
 0x15d   : > { %v487_v56 = vsub.f32 %v479_v55, %v483_v54 }
 0x15e   : > { %v470_v43 = vsel %vm469_vm10, %v806_v22, %v466_v40  ;;  %v446_v44 = vmul.f32 %v808_v27, %v445_v42 }
 0x15f   : > { %v478_v47 = vmul.f32 %v474_v41, %v470_v43 }
 0x160   : > { %v450_v48 = vsel %vm449_vm12, %v808_v27, %v446_v44 }
 0x161   : > { %v476_v49 = vmul.f32 %v472_v45, %v450_v48  ;;  %v486_v57 = vmul.f32 %v478_v47, %v1065_v61 }
 0x163   : > { %505 = vperm.xlu2 %798, %v478_v47   ;;  %497 = vperm.xlu0 %799, %v476_v49   ;;  %v484_v52 = vmul.f32 %v476_v49, %v1069_v4  ;;  %v490_v59 = vsub.f32 %v482_v58, %v486_v57  ;;  %v485_v4 = vmul.f32 %v477_v33, %v1057_v46 }
 0x165   : > { %v488_v53 = vsub.f32 %v480_v50, %v484_v52  ;;  %v489_v60 = vsub.f32 %v481_v51, %v485_v4 }
 0x167   : > { %537 = vperm.xlu1 %800, %v488_v53  }
 0x16b   : > { %533 = vperm.xlu2 %798, %v487_v56  }
 0x16f   : > { %545 = vperm.xlu1 %800, %v490_v59  }
 0x173   : > { %541 = vperm.xlu2 %798, %v489_v60  }
 0x1b5   : > { %v494_v62 = vpop.permute.xlu2 %493 }
 0x1b6   : > { %v510_v7 = vperm.slane %v494_v62, %v509_v6 }
 0x1b8   : > { %v527_v9 = vmul.f32 %v510_v7, %v1035_v1 }
 0x1bd   : > { %v506_v61 = vpop.permute.xlu2 %505 }
 0x1be   : > { %v522_v22 = vperm.slane %v506_v61, %v509_v6 }
 0x1c0   : > { %v530_v23 = vmul.f32 %v522_v22, %v1037_v2 }
 0x1c5   : > { %v534_v8 = vpop.permute.xlu2 %533 }
 0x1c6   : > { %v550_v10 = vperm.slane %v534_v8, %v509_v6 }
 0x1c8   : > { %v567_v11 = vadd.f32 %v550_v10, %v527_v9 }
 0x1ca   : > { %571 = vst [vmem:[%s241_s28] sm:$0xff] %v567_v11 }
 0x1cb   : > { %v502_v46 = vpop.permute.xlu1 %501 }
 0x1cc   : > { %v518_v12 = vperm.slane %v502_v46, %v509_v6 }
 0x1cd   : > { %v542_v13 = vpop.permute.xlu2 %541 }
 0x1ce   : > { %v529_v14 = vmul.f32 %v518_v12, %v1033_v0  ;;  %v558_v15 = vperm.slane %v542_v13, %v509_v6 }
 0x1d0   : > { %v569_v16 = vadd.f32 %v558_v15, %v529_v14 }
 0x1d2   : > { %573 = vst [vmem:[%s241_s28 + $0x10] sm:$0xff] %v569_v16 }
 0x1d5   : > { %v498_v17 = vpop.permute.xlu0 %497 }
 0x1d6   : > { %v514_v18 = vperm.slane %v498_v17, %v509_v6 }
 0x1d8   : > { %v528_v20 = vmul.f32 %v514_v18, %v1040_v3 }
 0x1d9   : > { %v538_v19 = vpop.permute.xlu1 %537 }
 0x1da   : > { %v554_v1 = vperm.slane %v538_v19, %v509_v6 }
 0x1dc   : > { %v568_v21 = vadd.f32 %v554_v1, %v528_v20 }
 0x1de   : > { %572 = vst [vmem:[%s241_s28 + $0x8] sm:$0xff] %v568_v21 }
 0x1e1   : > { %v546_v0 = vpop.permute.xlu1 %545 }
 0x1e2   : > { %v562_v24 = vperm.slane %v546_v0, %v509_v6 }
 0x1e4   : > { %v570_v3 = vadd.f32 %v562_v24, %v530_v23 }
 0x1e6   : > { %574 = vst [vmem:[%s241_s28 + $0x18] sm:$0xff] %v570_v3 }
 0x1e7   : > { %866 = shalt.err (!%p863_p13)
}
 0x1e8   : > { %s927_s19 = smov 128   ;;  %s928_s22 = smov 8  }
 0x1e9   : > { %732 = dma.vmem_to_hbm [thread:$0]  (%p1000_p9), %s592_s5, 512, %s594_s6, %s576_s7, %s927_s19, %s927_s19, %s928_s22  }
 0x1ea PF: > { %s608_s24 = sand.u32 1, %s901_s12   ;;  %p739_p0 = pnand %p716_p12, %p1007_p11 }
 0x1eb   : > { %s609_s28 = scalar_lea.sflag [#allocation4], %s608_s24 }
 0x1ec   : > { %p740_p1 = pneg %p739_p0 }
 0x1ee   : > { %896 = dma.done.wait (%p740_p1), %s609_s28, 512  }
 0x1ef   : > { %898 = vsyncadd (%p740_p1), %s609_s28, 4294966784  ;;  %s19_s17 = sadd.s32 1, %s921_s17   ;;  %s1165_s12 = smov %s905_s13 }
 0x1f0   : > { %p16_p2 = scmp.ge.s32.totalorder %s19_s17, 4   ;;  %s1166_s13 = smov %s909_s14 }
 0x1f1   : > { %s1167_s14 = smov %s1005_s26  ;;  %s1168_s15 = smov %s917_s16 }
 0x1f2   : > { %s1169_s16 = smov %s1171_s20  ;;  %18 = sbr.rel (!%p16_p2) target bundleno = 6 (0x6), region = 89 }
 0x1f7   :  { %615 = vsyncpa [#allocation3], 1 }
 0x1f8   :  { %617 = vsyncpa [#allocation3 + $0x1], 1 }
 0x1f9   :  { %618 = vsyncpa [#allocation4], 1 }
 0x1fa   :  { %620 = vsyncpa [#allocation4 + $0x1], 1 }

</bundles_post_ra>
